<compile_context>
chip_gen: v5e
topology: v5e:2x2
jax: 0.10.0
libtpu: 0.0.40
codegen_flags: <defaults>
</compile_context>

<pallas_src>
import functools

import jax
import jax.numpy as jnp
from jax import lax
from jax.experimental import pallas as pl
from jax.experimental.pallas import tpu as pltpu


# ----------------------------------------------------------------------------
# Helpers: device VMEM, sequence tiling / padding, VMEM limit estimate.
# ----------------------------------------------------------------------------
def _round_up(x, m):
    return ((x + m - 1) // m) * m


def _physical_vmem_bytes():
    """Per-TensorCore VMEM; conservative 64 MiB default (v7x-safe)."""
    try:
        kind = jax.devices()[0].device_kind.lower()
    except Exception:
        return 64 << 20
    if ("v5 lite" in kind) or ("v5e" in kind) or ("v6" in kind):
        return 128 << 20
    return 64 << 20


def _choose_seq_tiling(S, big_vmem):
    """Return (tq, S_pad): query-row tile size and padded sequence length."""
    if S <= 256:
        s_pad = _round_up(S, 8)
        return s_pad, s_pad                       # single tile
    s_pad = _round_up(S, 128)                     # padding waste <= 127 rows
    prefs = (512, 256, 128) if (big_vmem and S >= 1024) else (256, 128)
    for t in prefs:
        if s_pad % t == 0:
            return t, s_pad
    return 128, s_pad


def _vmem_limit_bytes(S_pad, D, F, tq, nhead, phys_vmem):
    dh = D // nhead
    dh_lanes = _round_up(dh, 128)                 # lane padding of (., dh) tiles
    s_lanes = _round_up(S_pad, 128)
    bf, f32 = 2, 4
    weights = (2 * D * D + 2 * D * F) * bf + (5 * D + F) * f32
    kv = nhead * dh * s_lanes * bf + nhead * S_pad * dh_lanes * bf
    xpos = 2 * tq * D * f32
    outb = tq * D * f32
    scratch = 2 * nhead * tq * dh_lanes * bf
    live = (2 * tq * s_lanes + 2 * tq * F + 10 * tq * D) * f32
    est = 2 * (weights + kv + xpos + outb) + scratch + live
    cap = (100 << 20) if phys_vmem >= (128 << 20) else (48 << 20)
    return int(min(max(est, 32 << 20), cap))


# ----------------------------------------------------------------------------
# One-time parameter preprocessing (done once, before the layer loop):
# bf16 MXU operands, 1/sqrt(dh) folded into wq / bq.
# ----------------------------------------------------------------------------
def prepare_layer_params(p, nhead):
    D = p["wq"].shape[0]
    dh = D // nhead
    scale = 1.0 / float(dh) ** 0.5
    bf = lambda a: a.astype(jnp.bfloat16)
    f32 = lambda a: a.astype(jnp.float32)
    return dict(
        wq=bf(p["wq"] * scale), bq=f32(p["bq"] * scale),
        wk=bf(p["wk"]), bk=f32(p["bk"]),
        wv=bf(p["wv"]), bv=f32(p["bv"]),
        wo=bf(p["wo"]), bo=f32(p["bo"]),
        w1=bf(p["w1"]), b1=f32(p["b1"]),
        w2=bf(p["w2"]), b2=f32(p["b2"]),
        g1=f32(p["g1"]), be1=f32(p["be1"]),
        g2=f32(p["g2"]), be2=f32(p["be2"]),
    )


# ----------------------------------------------------------------------------
# Per-layer K/V projection, hoisted out of the q-tile loop (review item 1).
# Full-width (., D)@(D, D) matmuls, once per layer, head-major bf16 outputs:
#   K -> (B, H, dh, S)   (contraction-ready for q_h @ k_h)
#   V -> (B, H, S, dh)
# Plain XLA here, as explicitly allowed by the review; the heavy per-token
# work stays inside the Pallas kernel below.
# ----------------------------------------------------------------------------
def _project_kv(x, pos, prm, nhead):
    B, S_pad, D = x.shape
    dh = D // nhead
    xp_b = (x + pos).astype(jnp.bfloat16)
    x_b = x.astype(jnp.bfloat16)
    k = jnp.dot(xp_b, prm["wk"], preferred_element_type=jnp.float32) + prm["bk"]
    v = jnp.dot(x_b, prm["wv"], preferred_element_type=jnp.float32) + prm["bv"]
    k_hm = k.reshape(B, S_pad, nhead, dh).transpose(0, 2, 3, 1).astype(jnp.bfloat16)
    v_hm = v.reshape(B, S_pad, nhead, dh).transpose(0, 2, 1, 3).astype(jnp.bfloat16)
    return k_hm, v_hm


# ----------------------------------------------------------------------------
# Pallas kernel: one encoder layer, one (batch, q-row-tile) grid step.
# ----------------------------------------------------------------------------
def encoder_layer_kernel(x_ref, pos_ref,                   # (tq, D) f32
                         k_ref, v_ref,                     # (H, dh, S) / (H, S, dh) bf16
                         wq_ref, bq_ref,                   # (D, D) bf16 (scale folded), (1, D) f32
                         wo_ref, bo_ref,                   # (D, D) bf16, (1, D) f32
                         w1_ref, b1_ref,                   # (D, F) bf16, (1, F) f32
                         w2_ref, b2_ref,                   # (F, D) bf16, (1, D) f32
                         g1_ref, be1_ref, g2_ref, be2_ref,  # (1, D) f32
                         out_ref,                          # (tq, D)
                         q_hm_ref, o_hm_ref,               # VMEM (H, tq, dh) bf16
                         *, nhead, seq_len, eps=1e-5):
    tq, D = x_ref.shape
    dh = D // nhead
    S_pad = v_ref.shape[1]

    x_tile = x_ref[...]                                    # (tq, D) f32 residual
    qk_in = (x_tile + pos_ref[...]).astype(jnp.bfloat16)   # (tq, D) query input

    # ---- Q projection: one full-width (tq, D)@(D, D) matmul (scale folded). --
    q_full = (jnp.dot(qk_in, wq_ref[...], preferred_element_type=jnp.float32)
              + bq_ref[...]).astype(jnp.bfloat16)          # (tq, D)
    # Static lane slices into a head-major scratch so the head loop below can
    # slice heads on the (free) leading axis with a dynamic index.
    for h in range(nhead):
        q_hm_ref[h] = q_full[:, h * dh:(h + 1) * dh]

    # Key mask for padded sequence positions (compile-time constant shape).
    if seq_len < S_pad:
        kmask = lax.broadcasted_iota(jnp.int32, (1, S_pad), 1) < seq_len
    else:
        kmask = None
    neg = jnp.finfo(jnp.float32).min

    # ---- per-head attention: fori_loop bounds the (tq, S) working set. -------
    def head_body(h, carry):
        q_h = q_hm_ref[h]                                  # (tq, dh) bf16
        s = jnp.dot(q_h, k_ref[h],
                    preferred_element_type=jnp.float32)    # (tq, S_pad) f32
        if kmask is not None:
            s = jnp.where(kmask, s, neg)
        s = s - jnp.max(s, axis=-1, keepdims=True)
        p = jnp.exp(s)
        # exact normalisation: cheap (tq,1) reciprocal, then broadcast multiply
        p = p * (1.0 / jnp.sum(p, axis=-1, keepdims=True))
        o_h = jnp.dot(p.astype(jnp.bfloat16), v_ref[h],
                      preferred_element_type=jnp.float32)  # (tq, dh) f32
        o_hm_ref[h] = o_h.astype(jnp.bfloat16)
        return carry

    lax.fori_loop(0, nhead, head_body, 0)

    # ---- output projection: one full-width (tq, D)@(D, D) matmul. ------------
    attn_cat = jnp.concatenate([o_hm_ref[h] for h in range(nhead)], axis=-1)
    attn = (jnp.dot(attn_cat, wo_ref[...],
                    preferred_element_type=jnp.float32) + bo_ref[...])

    # ---- residual + LayerNorm1 (two-pass variance, rsqrt on EUP). ------------
    h1 = x_tile + attn
    mu = jnp.mean(h1, axis=-1, keepdims=True)
    c1 = h1 - mu
    var = jnp.mean(c1 * c1, axis=-1, keepdims=True)
    h1 = c1 * lax.rsqrt(var + eps) * g1_ref[...] + be1_ref[...]

    # ---- FFN (relu) + residual + LayerNorm2 ----------------------------------
    f = (jnp.dot(h1.astype(jnp.bfloat16), w1_ref[...],
                 preferred_element_type=jnp.float32) + b1_ref[...])
    f = jnp.maximum(f, 0.0)
    f = (jnp.dot(f.astype(jnp.bfloat16), w2_ref[...],
                 preferred_element_type=jnp.float32) + b2_ref[...])
    h2 = h1 + f
    mu2 = jnp.mean(h2, axis=-1, keepdims=True)
    c2 = h2 - mu2
    var2 = jnp.mean(c2 * c2, axis=-1, keepdims=True)
    out = c2 * lax.rsqrt(var2 + eps) * g2_ref[...] + be2_ref[...]

    out_ref[...] = out.astype(out_ref.dtype)


# ----------------------------------------------------------------------------
# Wrapper: one encoder layer via pallas_call, grid = (batch, q-row tiles).
# ----------------------------------------------------------------------------
def encoder_layer_pallas(x, pos, prm, nhead, *, tq, seq_len, phys_vmem):
    B, S_pad, D = x.shape
    F = prm["w1"].shape[1]
    assert D % nhead == 0, "d_model must be divisible by nhead"
    assert S_pad % tq == 0
    dh = D // nhead
    n_qt = S_pad // tq

    # Hoisted K/V (batch-only index_map below -> DMA'd once per batch element,
    # resident across all q-tiles of that batch element).
    k_hm, v_hm = _project_kv(x, pos, prm, nhead)

    tile_spec = pl.BlockSpec((None, tq, D), lambda b, qi: (b, qi, 0))
    k_spec = pl.BlockSpec((None, nhead, dh, S_pad), lambda b, qi: (b, 0, 0, 0))
    v_spec = pl.BlockSpec((None, nhead, S_pad, dh), lambda b, qi: (b, 0, 0, 0))

    def const(shape):
        nd = len(shape)
        # NOTE: pipeline_mode=pl.Buffered(1) would single-buffer these constant
        # blocks (~1 MiB VMEM saving); left at the default for portability.
        return pl.BlockSpec(shape, lambda b, qi, _n=nd: (0,) * _n)

    in_specs = [
        tile_spec, tile_spec, k_spec, v_spec,
        const((D, D)), const((1, D)),      # wq (scale folded), bq
        const((D, D)), const((1, D)),      # wo, bo
        const((D, F)), const((1, F)),      # w1, b1
        const((F, D)), const((1, D)),      # w2, b2
        const((1, D)), const((1, D)), const((1, D)), const((1, D)),
    ]

    kernel = functools.partial(encoder_layer_kernel, nhead=nhead, seq_len=seq_len)
    return pl.pallas_call(
        kernel,
        out_shape=jax.ShapeDtypeStruct((B, S_pad, D), x.dtype),
        grid=(B, n_qt),
        in_specs=in_specs,
        out_specs=pl.BlockSpec((None, tq, D), lambda b, qi: (b, qi, 0)),
        scratch_shapes=[pltpu.VMEM((nhead, tq, dh), jnp.bfloat16),   # q head-major
                        pltpu.VMEM((nhead, tq, dh), jnp.bfloat16)],  # per-head outputs
        compiler_params=pltpu.CompilerParams(
            dimension_semantics=("parallel", "parallel"),
            vmem_limit_bytes=_vmem_limit_bytes(S_pad, D, F, tq, nhead, phys_vmem)),
    )(x, pos, k_hm, v_hm,
      prm["wq"], prm["bq"], prm["wo"], prm["bo"],
      prm["w1"], prm["b1"], prm["w2"], prm["b2"],
      prm["g1"], prm["be1"], prm["g2"], prm["be2"])


def transformer_encoder_pallas(src, pos, layer_params, nhead):
    """TransformerEncoder.forward with mask=None, src_key_padding_mask=None."""
    B, S, D = src.shape
    # one-time parameter preprocessing, outside the layer loop
    prepped = [prepare_layer_params(p, nhead) for p in layer_params]

    phys_vmem = _physical_vmem_bytes()
    tq, S_pad = _choose_seq_tiling(S, phys_vmem >= (128 << 20))

    x, pp = src, pos
    if S_pad != S:
        padcfg = ((0, 0), (0, S_pad - S), (0, 0))
        x = jnp.pad(src, padcfg)
        pp = jnp.pad(pos, padcfg)

    # Future work: fuse all layers into one pallas_call (layer grid axis) or
    # cross-call weight prefetch (P10) to hide next-layer weight DMA.
    for prm in prepped:
        x = encoder_layer_pallas(x, pp, prm, nhead,
                                 tq=tq, seq_len=S, phys_vmem=phys_vmem)

    # module default norm=None; a trailing LayerNorm would be trivial glue here.
    return x[:, :S, :] if S_pad != S else x


# ----------------------------------------------------------------------------
# Pure-JAX f32 reference (same math) for correctness checking.
# ----------------------------------------------------------------------------
def encoder_layer_ref(x, pos, p, nhead, eps=1e-5):
    B, S, D = x.shape
    dh = D // nhead
    scale = 1.0 / (dh ** 0.5)
    qk_in = x + pos
    q = qk_in @ p["wq"] + p["bq"]
    k = qk_in @ p["wk"] + p["bk"]
    v = x @ p["wv"] + p["bv"]
    q = q.reshape(B, S, nhead, dh).transpose(0, 2, 1, 3)
    k = k.reshape(B, S, nhead, dh).transpose(0, 2, 1, 3)
    v = v.reshape(B, S, nhead, dh).transpose(0, 2, 1, 3)
    s = jnp.einsum("bhqd,bhkd->bhqk", q, k) * scale
    a = jax.nn.softmax(s, axis=-1)
    o = jnp.einsum("bhqk,bhkd->bhqd", a, v).transpose(0, 2, 1, 3).reshape(B, S, D)
    attn = o @ p["wo"] + p["bo"]

    def ln(y, g, b):
        mu = jnp.mean(y, axis=-1, keepdims=True)
        var = jnp.mean((y - mu) ** 2, axis=-1, keepdims=True)
        return (y - mu) * lax.rsqrt(var + eps) * g + b

    h1 = ln(x + attn, p["g1"], p["be1"])
    f = jnp.maximum(h1 @ p["w1"] + p["b1"], 0.0) @ p["w2"] + p["b2"]
    return ln(h1 + f, p["g2"], p["be2"])


def transformer_encoder_ref(src, pos, layer_params, nhead):
    out = src
    for p in layer_params:
        out = encoder_layer_ref(out, pos, p, nhead)
    return out


# ----------------------------------------------------------------------------
# Deterministic parameter init (shapes match nn.MultiheadAttention / Linear /
# LayerNorm of a DETR TransformerEncoderLayer; weights pre-transposed (in, out)).
# ----------------------------------------------------------------------------
def init_layer_params(key, d_model, dim_ff):
    ks = jax.random.split(key, 12)
    w = lambda k, shape: (0.05 * jax.random.normal(k, shape)).astype(jnp.float32)
    return dict(
        wq=w(ks[0], (d_model, d_model)), bq=w(ks[1], (1, d_model)),
        wk=w(ks[2], (d_model, d_model)), bk=w(ks[3], (1, d_model)),
        wv=w(ks[4], (d_model, d_model)), bv=w(ks[5], (1, d_model)),
        wo=w(ks[6], (d_model, d_model)), bo=w(ks[7], (1, d_model)),
        w1=w(ks[8], (d_model, dim_ff)),  b1=w(ks[9], (1, dim_ff)),
        w2=w(ks[10], (dim_ff, d_model)), b2=w(ks[11], (1, d_model)),
        g1=jnp.ones((1, d_model), jnp.float32), be1=jnp.zeros((1, d_model), jnp.float32),
        g2=jnp.ones((1, d_model), jnp.float32), be2=jnp.zeros((1, d_model), jnp.float32),
    )


if __name__ == "__main__":
    B, S, D = 2, 8, 32
    NHEAD, DIM_FF, NUM_LAYERS = 4, 64, 2

    key = jax.random.PRNGKey(0)
    k_x, k_pos, k_params = jax.random.split(key, 3)
    src = jax.random.normal(k_x, (B, S, D), dtype=jnp.float32)
    pos = jax.random.normal(k_pos, (B, S, D), dtype=jnp.float32)

    layer_keys = jax.random.split(k_params, NUM_LAYERS)
    layer_params = [init_layer_params(k, D, DIM_FF) for k in layer_keys]

    # --- check 1: small, tile-aligned sequence, 2 layers ----------------------
    out = jax.block_until_ready(transformer_encoder_pallas(src, pos, layer_params, NHEAD))
    ref = transformer_encoder_ref(src, pos, layer_params, NHEAD)
    assert out.shape == (B, S, D)
    err = float(jnp.max(jnp.abs(out - ref)))
    # bf16 MXU operands => looser tolerance than pure f32.
    assert jnp.allclose(out, ref, rtol=3e-2, atol=3e-2), \
        f"mismatch vs reference (max abs err {err})"

    # --- check 2: ragged sequence -> padding + softmax masking + multi q-tile --
    S2 = 300
    src2 = jax.random.normal(jax.random.PRNGKey(1), (1, S2, D), dtype=jnp.float32)
    pos2 = jax.random.normal(jax.random.PRNGKey(2), (1, S2, D), dtype=jnp.float32)
    out2 = jax.block_until_ready(
        transformer_encoder_pallas(src2, pos2, layer_params[:1], NHEAD))
    ref2 = transformer_encoder_ref(src2, pos2, layer_params[:1], NHEAD)
    assert out2.shape == (1, S2, D)
    err2 = float(jnp.max(jnp.abs(out2 - ref2)))
    assert jnp.allclose(out2, ref2, rtol=3e-2, atol=3e-2), \
        f"mismatch vs reference on padded path (max abs err {err2})"

    print("KERNEL_OK")
</pallas_src>

<mosaic_0001>
module attributes {stable_mosaic.version = 11 : i64} {
  func.func @encoder_layer_kernel(%arg0: i32, %arg1: i32, %arg2: memref<1x8x32xf32, #tpu.memory_space<vmem>>, %arg3: memref<1x8x32xf32, #tpu.memory_space<vmem>>, %arg4: memref<1x4x8x8xbf16, #tpu.memory_space<vmem>>, %arg5: memref<1x4x8x8xbf16, #tpu.memory_space<vmem>>, %arg6: memref<32x32xbf16, #tpu.memory_space<vmem>>, %arg7: memref<1x32xf32, #tpu.memory_space<vmem>>, %arg8: memref<32x32xbf16, #tpu.memory_space<vmem>>, %arg9: memref<1x32xf32, #tpu.memory_space<vmem>>, %arg10: memref<32x64xbf16, #tpu.memory_space<vmem>>, %arg11: memref<1x64xf32, #tpu.memory_space<vmem>>, %arg12: memref<64x32xbf16, #tpu.memory_space<vmem>>, %arg13: memref<1x32xf32, #tpu.memory_space<vmem>>, %arg14: memref<1x32xf32, #tpu.memory_space<vmem>>, %arg15: memref<1x32xf32, #tpu.memory_space<vmem>>, %arg16: memref<1x32xf32, #tpu.memory_space<vmem>>, %arg17: memref<1x32xf32, #tpu.memory_space<vmem>>, %arg18: memref<1x8x32xf32, #tpu.memory_space<vmem>>, %arg19: memref<4x8x8xbf16, #tpu.memory_space<vmem>>, %arg20: memref<4x8x8xbf16, #tpu.memory_space<vmem>>) attributes {dimension_semantics = [#tpu.dimension_semantics<parallel>, #tpu.dimension_semantics<parallel>], iteration_bounds = array<i64: 2, 1>, scalar_prefetch = 0 : i64, scratch_operands = 2 : i64, tpu.core_type = #tpu.core_type<tc>, window_params = [{transform_indices = @transform_0, window_bounds = array<i64: 1, 8, 32>}, {transform_indices = @transform_1, window_bounds = array<i64: 1, 8, 32>}, {transform_indices = @transform_2, window_bounds = array<i64: 1, 4, 8, 8>}, {transform_indices = @transform_3, window_bounds = array<i64: 1, 4, 8, 8>}, {pipeline_mode = #tpu.pipeline_mode<synchronous>, transform_indices = @transform_4, window_bounds = array<i64: 32, 32>}, {pipeline_mode = #tpu.pipeline_mode<synchronous>, transform_indices = @transform_5, window_bounds = array<i64: 1, 32>}, {pipeline_mode = #tpu.pipeline_mode<synchronous>, transform_indices = @transform_6, window_bounds = array<i64: 32, 32>}, {pipeline_mode = #tpu.pipeline_mode<synchronous>, transform_indices = @transform_7, window_bounds = array<i64: 1, 32>}, {pipeline_mode = #tpu.pipeline_mode<synchronous>, transform_indices = @transform_8, window_bounds = array<i64: 32, 64>}, {pipeline_mode = #tpu.pipeline_mode<synchronous>, transform_indices = @transform_9, window_bounds = array<i64: 1, 64>}, {pipeline_mode = #tpu.pipeline_mode<synchronous>, transform_indices = @transform_10, window_bounds = array<i64: 64, 32>}, {pipeline_mode = #tpu.pipeline_mode<synchronous>, transform_indices = @transform_11, window_bounds = array<i64: 1, 32>}, {pipeline_mode = #tpu.pipeline_mode<synchronous>, transform_indices = @transform_12, window_bounds = array<i64: 1, 32>}, {pipeline_mode = #tpu.pipeline_mode<synchronous>, transform_indices = @transform_13, window_bounds = array<i64: 1, 32>}, {pipeline_mode = #tpu.pipeline_mode<synchronous>, transform_indices = @transform_14, window_bounds = array<i64: 1, 32>}, {pipeline_mode = #tpu.pipeline_mode<synchronous>, transform_indices = @transform_15, window_bounds = array<i64: 1, 32>}, {transform_indices = @transform_16, window_bounds = array<i64: 1, 8, 32>}]} {
    %c0 = arith.constant 0 : index
    %c0_0 = arith.constant 0 : index
    %c0_1 = arith.constant 0 : index
    %0 = vector.load %arg2[%c0, %c0_0, %c0_1] : memref<1x8x32xf32, #tpu.memory_space<vmem>>, vector<1x8x32xf32>
    %1 = vector.shape_cast %0 : vector<1x8x32xf32> to vector<8x32xf32>
    %c0_2 = arith.constant 0 : index
    %c0_3 = arith.constant 0 : index
    %c0_4 = arith.constant 0 : index
    %2 = vector.load %arg3[%c0_2, %c0_3, %c0_4] : memref<1x8x32xf32, #tpu.memory_space<vmem>>, vector<1x8x32xf32>
    %3 = vector.shape_cast %2 : vector<1x8x32xf32> to vector<8x32xf32>
    %4 = arith.addf %1, %3 : vector<8x32xf32>
    %5 = arith.truncf %4 : vector<8x32xf32> to vector<8x32xbf16>
    %c0_5 = arith.constant 0 : index
    %c0_6 = arith.constant 0 : index
    %6 = vector.load %arg6[%c0_5, %c0_6] : memref<32x32xbf16, #tpu.memory_space<vmem>>, vector<32x32xbf16>
    %cst = arith.constant dense<0.000000e+00> : vector<8x32xf32>
    %7 = tpu.matmul %5, %6, %cst {dimension_numbers = #tpu.dot_dimension_numbers<[1], [0], [0], [1], [0, 0, 1, 1], [], []>} : vector<8x32xbf16>, vector<32x32xbf16>, vector<8x32xf32> -> vector<8x32xf32>
    %c0_7 = arith.constant 0 : index
    %c0_8 = arith.constant 0 : index
    %8 = vector.load %arg7[%c0_7, %c0_8] : memref<1x32xf32, #tpu.memory_space<vmem>>, vector<1x32xf32>
    %9 = vector.broadcast %8 : vector<1x32xf32> to vector<8x32xf32>
    %10 = arith.addf %7, %9 : vector<8x32xf32>
    %11 = arith.truncf %10 : vector<8x32xf32> to vector<8x32xbf16>
    %12 = vector.extract_strided_slice %11 {offsets = [0, 0], sizes = [8, 8], strides = [1, 1]} : vector<8x32xbf16> to vector<8x8xbf16>
    %c0_9 = arith.constant 0 : index
    %c0_10 = arith.constant 0 : index
    %c0_11 = arith.constant 0 : index
    %13 = vector.load %arg19[%c0_9, %c0_10, %c0_11] : memref<4x8x8xbf16, #tpu.memory_space<vmem>>, vector<1x8x8xbf16>
    %14 = vector.shape_cast %13 : vector<1x8x8xbf16> to vector<8x8xbf16>
    %15 = vector.shape_cast %12 : vector<8x8xbf16> to vector<1x8x8xbf16>
    tpu.vector_store %arg19[%c0_9, %c0_10, %c0_11], %15 {strides = array<i32>} : memref<4x8x8xbf16, #tpu.memory_space<vmem>>, vector<1x8x8xbf16>,
    %16 = vector.extract_strided_slice %11 {offsets = [0, 8], sizes = [8, 8], strides = [1, 1]} : vector<8x32xbf16> to vector<8x8xbf16>
    %c1 = arith.constant 1 : index
    %c0_12 = arith.constant 0 : index
    %c0_13 = arith.constant 0 : index
    %17 = vector.load %arg19[%c1, %c0_12, %c0_13] : memref<4x8x8xbf16, #tpu.memory_space<vmem>>, vector<1x8x8xbf16>
    %18 = vector.shape_cast %17 : vector<1x8x8xbf16> to vector<8x8xbf16>
    %19 = vector.shape_cast %16 : vector<8x8xbf16> to vector<1x8x8xbf16>
    tpu.vector_store %arg19[%c1, %c0_12, %c0_13], %19 {strides = array<i32>} : memref<4x8x8xbf16, #tpu.memory_space<vmem>>, vector<1x8x8xbf16>,
    %20 = vector.extract_strided_slice %11 {offsets = [0, 16], sizes = [8, 8], strides = [1, 1]} : vector<8x32xbf16> to vector<8x8xbf16>
    %c2 = arith.constant 2 : index
    %c0_14 = arith.constant 0 : index
    %c0_15 = arith.constant 0 : index
    %21 = vector.load %arg19[%c2, %c0_14, %c0_15] : memref<4x8x8xbf16, #tpu.memory_space<vmem>>, vector<1x8x8xbf16>
    %22 = vector.shape_cast %21 : vector<1x8x8xbf16> to vector<8x8xbf16>
    %23 = vector.shape_cast %20 : vector<8x8xbf16> to vector<1x8x8xbf16>
    tpu.vector_store %arg19[%c2, %c0_14, %c0_15], %23 {strides = array<i32>} : memref<4x8x8xbf16, #tpu.memory_space<vmem>>, vector<1x8x8xbf16>,
    %24 = vector.extract_strided_slice %11 {offsets = [0, 24], sizes = [8, 8], strides = [1, 1]} : vector<8x32xbf16> to vector<8x8xbf16>
    %c3 = arith.constant 3 : index
    %c0_16 = arith.constant 0 : index
    %c0_17 = arith.constant 0 : index
    %25 = vector.load %arg19[%c3, %c0_16, %c0_17] : memref<4x8x8xbf16, #tpu.memory_space<vmem>>, vector<1x8x8xbf16>
    %26 = vector.shape_cast %25 : vector<1x8x8xbf16> to vector<8x8xbf16>
    %27 = vector.shape_cast %24 : vector<8x8xbf16> to vector<1x8x8xbf16>
    tpu.vector_store %arg19[%c3, %c0_16, %c0_17], %27 {strides = array<i32>} : memref<4x8x8xbf16, #tpu.memory_space<vmem>>, vector<1x8x8xbf16>,
    %c0_i32 = arith.constant 0 : i32
    %c4_i32 = arith.constant 4 : i32
    %28 = arith.addi %c0_i32, %c4_i32 : i32
    %c1_i32 = arith.constant 1 : i32
    scf.for %arg21 = %c0_i32 to %28 step %c1_i32  : i32 {
      %106 = arith.index_cast %arg21 : i32 to index
      %c0_68 = arith.constant 0 : index
      %c0_69 = arith.constant 0 : index
      %107 = vector.load %arg19[%106, %c0_68, %c0_69] : memref<4x8x8xbf16, #tpu.memory_space<vmem>>, vector<1x8x8xbf16>
      %108 = vector.shape_cast %107 : vector<1x8x8xbf16> to vector<8x8xbf16>
      %c0_70 = arith.constant 0 : index
      %109 = arith.index_cast %arg21 : i32 to index
      %c0_71 = arith.constant 0 : index
      %c0_72 = arith.constant 0 : index
      %110 = vector.load %arg4[%c0_70, %109, %c0_71, %c0_72] : memref<1x4x8x8xbf16, #tpu.memory_space<vmem>>, vector<1x1x8x8xbf16>
      %111 = vector.shape_cast %110 : vector<1x1x8x8xbf16> to vector<8x8xbf16>
      %cst_73 = arith.constant dense<0.000000e+00> : vector<8x8xf32>
      %112 = tpu.matmul %108, %111, %cst_73 {dimension_numbers = #tpu.dot_dimension_numbers<[1], [0], [0], [1], [0, 0, 1, 1], [], []>} : vector<8x8xbf16>, vector<8x8xbf16>, vector<8x8xf32> -> vector<8x8xf32>
      %cst_74 = arith.constant dense<0xFF800000> : vector<8xf32>
      %113 = vector.multi_reduction <maximumf>, %112, %cst_74 [1] : vector<8x8xf32> to vector<8xf32>
      %114 = vector.shape_cast %113 : vector<8xf32> to vector<8x1xf32>
      %115 = vector.broadcast %114 : vector<8x1xf32> to vector<8x8xf32>
      %116 = arith.subf %112, %115 : vector<8x8xf32>
      %117 = math.exp %116 : vector<8x8xf32>
      %cst_75 = arith.constant dense<0.000000e+00> : vector<8xf32>
      %118 = vector.multi_reduction <add>, %117, %cst_75 [1] : vector<8x8xf32> to vector<8xf32>
      %119 = vector.shape_cast %118 : vector<8xf32> to vector<8x1xf32>
      %cst_76 = arith.constant 1.000000e+00 : f32
      %120 = vector.broadcast %cst_76 : f32 to vector<8x1xf32>
      %121 = arith.divf %120, %119 : vector<8x1xf32>
      %122 = vector.broadcast %121 : vector<8x1xf32> to vector<8x8xf32>
      %123 = arith.mulf %117, %122 : vector<8x8xf32>
      %124 = arith.truncf %123 : vector<8x8xf32> to vector<8x8xbf16>
      %c0_77 = arith.constant 0 : index
      %125 = arith.index_cast %arg21 : i32 to index
      %c0_78 = arith.constant 0 : index
      %c0_79 = arith.constant 0 : index
      %126 = vector.load %arg5[%c0_77, %125, %c0_78, %c0_79] : memref<1x4x8x8xbf16, #tpu.memory_space<vmem>>, vector<1x1x8x8xbf16>
      %127 = vector.shape_cast %126 : vector<1x1x8x8xbf16> to vector<8x8xbf16>
      %cst_80 = arith.constant dense<0.000000e+00> : vector<8x8xf32>
      %128 = tpu.matmul %124, %127, %cst_80 {dimension_numbers = #tpu.dot_dimension_numbers<[1], [0], [0], [1], [0, 0, 1, 1], [], []>} : vector<8x8xbf16>, vector<8x8xbf16>, vector<8x8xf32> -> vector<8x8xf32>
      %129 = arith.truncf %128 : vector<8x8xf32> to vector<8x8xbf16>
      %130 = arith.index_cast %arg21 : i32 to index
      %c0_81 = arith.constant 0 : index
      %c0_82 = arith.constant 0 : index
      %131 = vector.load %arg20[%130, %c0_81, %c0_82] : memref<4x8x8xbf16, #tpu.memory_space<vmem>>, vector<1x8x8xbf16>
      %132 = vector.shape_cast %131 : vector<1x8x8xbf16> to vector<8x8xbf16>
      %133 = vector.shape_cast %129 : vector<8x8xbf16> to vector<1x8x8xbf16>
      tpu.vector_store %arg20[%130, %c0_81, %c0_82], %133 {strides = array<i32>} : memref<4x8x8xbf16, #tpu.memory_space<vmem>>, vector<1x8x8xbf16>,
    }
    %c4_i32_18 = arith.constant 4 : i32
    %c0_19 = arith.constant 0 : index
    %c0_20 = arith.constant 0 : index
    %c0_21 = arith.constant 0 : index
    %29 = vector.load %arg20[%c0_19, %c0_20, %c0_21] : memref<4x8x8xbf16, #tpu.memory_space<vmem>>, vector<1x8x8xbf16>
    %30 = vector.shape_cast %29 : vector<1x8x8xbf16> to vector<8x8xbf16>
    %c1_22 = arith.constant 1 : index
    %c0_23 = arith.constant 0 : index
    %c0_24 = arith.constant 0 : index
    %31 = vector.load %arg20[%c1_22, %c0_23, %c0_24] : memref<4x8x8xbf16, #tpu.memory_space<vmem>>, vector<1x8x8xbf16>
    %32 = vector.shape_cast %31 : vector<1x8x8xbf16> to vector<8x8xbf16>
    %c2_25 = arith.constant 2 : index
    %c0_26 = arith.constant 0 : index
    %c0_27 = arith.constant 0 : index
    %33 = vector.load %arg20[%c2_25, %c0_26, %c0_27] : memref<4x8x8xbf16, #tpu.memory_space<vmem>>, vector<1x8x8xbf16>
    %34 = vector.shape_cast %33 : vector<1x8x8xbf16> to vector<8x8xbf16>
    %c3_28 = arith.constant 3 : index
    %c0_29 = arith.constant 0 : index
    %c0_30 = arith.constant 0 : index
    %35 = vector.load %arg20[%c3_28, %c0_29, %c0_30] : memref<4x8x8xbf16, #tpu.memory_space<vmem>>, vector<1x8x8xbf16>
    %36 = vector.shape_cast %35 : vector<1x8x8xbf16> to vector<8x8xbf16>
    %37 = tpu.concatenate %30, %32, %34, %36 in 1 : vector<8x8xbf16>, vector<8x8xbf16>, vector<8x8xbf16>, vector<8x8xbf16> -> vector<8x32xbf16>
    %c0_31 = arith.constant 0 : index
    %c0_32 = arith.constant 0 : index
    %38 = vector.load %arg8[%c0_31, %c0_32] : memref<32x32xbf16, #tpu.memory_space<vmem>>, vector<32x32xbf16>
    %cst_33 = arith.constant dense<0.000000e+00> : vector<8x32xf32>
    %39 = tpu.matmul %37, %38, %cst_33 {dimension_numbers = #tpu.dot_dimension_numbers<[1], [0], [0], [1], [0, 0, 1, 1], [], []>} : vector<8x32xbf16>, vector<32x32xbf16>, vector<8x32xf32> -> vector<8x32xf32>
    %c0_34 = arith.constant 0 : index
    %c0_35 = arith.constant 0 : index
    %40 = vector.load %arg9[%c0_34, %c0_35] : memref<1x32xf32, #tpu.memory_space<vmem>>, vector<1x32xf32>
    %41 = vector.broadcast %40 : vector<1x32xf32> to vector<8x32xf32>
    %42 = arith.addf %39, %41 : vector<8x32xf32>
    %43 = arith.addf %1, %42 : vector<8x32xf32>
    %cst_36 = arith.constant dense<0.000000e+00> : vector<8xf32>
    %44 = vector.multi_reduction <add>, %43, %cst_36 [1] : vector<8x32xf32> to vector<8xf32>
    %45 = vector.shape_cast %44 : vector<8xf32> to vector<8x1xf32>
    %cst_37 = arith.constant 3.200000e+01 : f32
    %46 = vector.broadcast %cst_37 : f32 to vector<8x1xf32>
    %47 = arith.divf %45, %46 : vector<8x1xf32>
    %48 = vector.broadcast %47 : vector<8x1xf32> to vector<8x32xf32>
    %49 = arith.subf %43, %48 : vector<8x32xf32>
    %50 = arith.mulf %49, %49 : vector<8x32xf32>
    %cst_38 = arith.constant dense<0.000000e+00> : vector<8xf32>
    %51 = vector.multi_reduction <add>, %50, %cst_38 [1] : vector<8x32xf32> to vector<8xf32>
    %52 = vector.shape_cast %51 : vector<8xf32> to vector<8x1xf32>
    %cst_39 = arith.constant 3.200000e+01 : f32
    %53 = vector.broadcast %cst_39 : f32 to vector<8x1xf32>
    %54 = arith.divf %52, %53 : vector<8x1xf32>
    %cst_40 = arith.constant 9.99999974E-6 : f32
    %55 = vector.broadcast %cst_40 : f32 to vector<8x1xf32>
    %56 = arith.addf %54, %55 : vector<8x1xf32>
    %57 = math.rsqrt %56 : vector<8x1xf32>
    %58 = vector.broadcast %57 : vector<8x1xf32> to vector<8x32xf32>
    %59 = arith.mulf %49, %58 : vector<8x32xf32>
    %c0_41 = arith.constant 0 : index
    %c0_42 = arith.constant 0 : index
    %60 = vector.load %arg14[%c0_41, %c0_42] : memref<1x32xf32, #tpu.memory_space<vmem>>, vector<1x32xf32>
    %61 = vector.broadcast %60 : vector<1x32xf32> to vector<8x32xf32>
    %62 = arith.mulf %59, %61 : vector<8x32xf32>
    %c0_43 = arith.constant 0 : index
    %c0_44 = arith.constant 0 : index
    %63 = vector.load %arg15[%c0_43, %c0_44] : memref<1x32xf32, #tpu.memory_space<vmem>>, vector<1x32xf32>
    %64 = vector.broadcast %63 : vector<1x32xf32> to vector<8x32xf32>
    %65 = arith.addf %62, %64 : vector<8x32xf32>
    %66 = arith.truncf %65 : vector<8x32xf32> to vector<8x32xbf16>
    %c0_45 = arith.constant 0 : index
    %c0_46 = arith.constant 0 : index
    %67 = vector.load %arg10[%c0_45, %c0_46] : memref<32x64xbf16, #tpu.memory_space<vmem>>, vector<32x64xbf16>
    %cst_47 = arith.constant dense<0.000000e+00> : vector<8x64xf32>
    %68 = tpu.matmul %66, %67, %cst_47 {dimension_numbers = #tpu.dot_dimension_numbers<[1], [0], [0], [1], [0, 0, 1, 1], [], []>} : vector<8x32xbf16>, vector<32x64xbf16>, vector<8x64xf32> -> vector<8x64xf32>
    %c0_48 = arith.constant 0 : index
    %c0_49 = arith.constant 0 : index
    %69 = vector.load %arg11[%c0_48, %c0_49] : memref<1x64xf32, #tpu.memory_space<vmem>>, vector<1x64xf32>
    %70 = vector.broadcast %69 : vector<1x64xf32> to vector<8x64xf32>
    %71 = arith.addf %68, %70 : vector<8x64xf32>
    %cst_50 = arith.constant 0.000000e+00 : f32
    %72 = vector.broadcast %cst_50 : f32 to vector<8x64xf32>
    %73 = arith.maximumf %71, %72 : vector<8x64xf32>
    %74 = arith.truncf %73 : vector<8x64xf32> to vector<8x64xbf16>
    %c0_51 = arith.constant 0 : index
    %c0_52 = arith.constant 0 : index
    %75 = vector.load %arg12[%c0_51, %c0_52] : memref<64x32xbf16, #tpu.memory_space<vmem>>, vector<64x32xbf16>
    %cst_53 = arith.constant dense<0.000000e+00> : vector<8x32xf32>
    %76 = tpu.matmul %74, %75, %cst_53 {dimension_numbers = #tpu.dot_dimension_numbers<[1], [0], [0], [1], [0, 0, 1, 1], [], []>} : vector<8x64xbf16>, vector<64x32xbf16>, vector<8x32xf32> -> vector<8x32xf32>
    %c0_54 = arith.constant 0 : index
    %c0_55 = arith.constant 0 : index
    %77 = vector.load %arg13[%c0_54, %c0_55] : memref<1x32xf32, #tpu.memory_space<vmem>>, vector<1x32xf32>
    %78 = vector.broadcast %77 : vector<1x32xf32> to vector<8x32xf32>
    %79 = arith.addf %76, %78 : vector<8x32xf32>
    %80 = arith.addf %65, %79 : vector<8x32xf32>
    %cst_56 = arith.constant dense<0.000000e+00> : vector<8xf32>
    %81 = vector.multi_reduction <add>, %80, %cst_56 [1] : vector<8x32xf32> to vector<8xf32>
    %82 = vector.shape_cast %81 : vector<8xf32> to vector<8x1xf32>
    %cst_57 = arith.constant 3.200000e+01 : f32
    %83 = vector.broadcast %cst_57 : f32 to vector<8x1xf32>
    %84 = arith.divf %82, %83 : vector<8x1xf32>
    %85 = vector.broadcast %84 : vector<8x1xf32> to vector<8x32xf32>
    %86 = arith.subf %80, %85 : vector<8x32xf32>
    %87 = arith.mulf %86, %86 : vector<8x32xf32>
    %cst_58 = arith.constant dense<0.000000e+00> : vector<8xf32>
    %88 = vector.multi_reduction <add>, %87, %cst_58 [1] : vector<8x32xf32> to vector<8xf32>
    %89 = vector.shape_cast %88 : vector<8xf32> to vector<8x1xf32>
    %cst_59 = arith.constant 3.200000e+01 : f32
    %90 = vector.broadcast %cst_59 : f32 to vector<8x1xf32>
    %91 = arith.divf %89, %90 : vector<8x1xf32>
    %cst_60 = arith.constant 9.99999974E-6 : f32
    %92 = vector.broadcast %cst_60 : f32 to vector<8x1xf32>
    %93 = arith.addf %91, %92 : vector<8x1xf32>
    %94 = math.rsqrt %93 : vector<8x1xf32>
    %95 = vector.broadcast %94 : vector<8x1xf32> to vector<8x32xf32>
    %96 = arith.mulf %86, %95 : vector<8x32xf32>
    %c0_61 = arith.constant 0 : index
    %c0_62 = arith.constant 0 : index
    %97 = vector.load %arg16[%c0_61, %c0_62] : memref<1x32xf32, #tpu.memory_space<vmem>>, vector<1x32xf32>
    %98 = vector.broadcast %97 : vector<1x32xf32> to vector<8x32xf32>
    %99 = arith.mulf %96, %98 : vector<8x32xf32>
    %c0_63 = arith.constant 0 : index
    %c0_64 = arith.constant 0 : index
    %100 = vector.load %arg17[%c0_63, %c0_64] : memref<1x32xf32, #tpu.memory_space<vmem>>, vector<1x32xf32>
    %101 = vector.broadcast %100 : vector<1x32xf32> to vector<8x32xf32>
    %102 = arith.addf %99, %101 : vector<8x32xf32>
    %c0_65 = arith.constant 0 : index
    %c0_66 = arith.constant 0 : index
    %c0_67 = arith.constant 0 : index
    %103 = vector.load %arg18[%c0_65, %c0_66, %c0_67] : memref<1x8x32xf32, #tpu.memory_space<vmem>>, vector<1x8x32xf32>
    %104 = vector.shape_cast %103 : vector<1x8x32xf32> to vector<8x32xf32>
    %105 = vector.shape_cast %102 : vector<8x32xf32> to vector<1x8x32xf32>
    tpu.vector_store %arg18[%c0_65, %c0_66, %c0_67], %105 {strides = array<i32>} : memref<1x8x32xf32, #tpu.memory_space<vmem>>, vector<1x8x32xf32>,
    return
  }
  func.func @transform_0(%arg0: i32, %arg1: i32) -> (i32, i32, i32) {
    %c0_i32 = arith.constant 0 : i32
    %c0_i32_0 = arith.constant 0 : i32
    return %arg0, %arg1, %c0_i32 : i32, i32, i32
  }
  func.func @transform_1(%arg0: i32, %arg1: i32) -> (i32, i32, i32) {
    %c0_i32 = arith.constant 0 : i32
    %c0_i32_0 = arith.constant 0 : i32
    return %arg0, %arg1, %c0_i32 : i32, i32, i32
  }
  func.func @transform_2(%arg0: i32, %arg1: i32) -> (i32, i32, i32, i32) {
    %c0_i32 = arith.constant 0 : i32
    %c0_i32_0 = arith.constant 0 : i32
    %c0_i32_1 = arith.constant 0 : i32
    %c0_i32_2 = arith.constant 0 : i32
    return %arg0, %c0_i32, %c0_i32_0, %c0_i32_1 : i32, i32, i32, i32
  }
  func.func @transform_3(%arg0: i32, %arg1: i32) -> (i32, i32, i32, i32) {
    %c0_i32 = arith.constant 0 : i32
    %c0_i32_0 = arith.constant 0 : i32
    %c0_i32_1 = arith.constant 0 : i32
    %c0_i32_2 = arith.constant 0 : i32
    return %arg0, %c0_i32, %c0_i32_0, %c0_i32_1 : i32, i32, i32, i32
  }
  func.func @transform_4(%arg0: i32, %arg1: i32) -> (i32, i32) {
    %c0_i32 = arith.constant 0 : i32
    %c0_i32_0 = arith.constant 0 : i32
    %c0_i32_1 = arith.constant 0 : i32
    return %c0_i32, %c0_i32_0 : i32, i32
  }
  func.func @transform_5(%arg0: i32, %arg1: i32) -> (i32, i32) {
    %c0_i32 = arith.constant 0 : i32
    %c0_i32_0 = arith.constant 0 : i32
    %c0_i32_1 = arith.constant 0 : i32
    return %c0_i32, %c0_i32_0 : i32, i32
  }
  func.func @transform_6(%arg0: i32, %arg1: i32) -> (i32, i32) {
    %c0_i32 = arith.constant 0 : i32
    %c0_i32_0 = arith.constant 0 : i32
    %c0_i32_1 = arith.constant 0 : i32
    return %c0_i32, %c0_i32_0 : i32, i32
  }
  func.func @transform_7(%arg0: i32, %arg1: i32) -> (i32, i32) {
    %c0_i32 = arith.constant 0 : i32
    %c0_i32_0 = arith.constant 0 : i32
    %c0_i32_1 = arith.constant 0 : i32
    return %c0_i32, %c0_i32_0 : i32, i32
  }
  func.func @transform_8(%arg0: i32, %arg1: i32) -> (i32, i32) {
    %c0_i32 = arith.constant 0 : i32
    %c0_i32_0 = arith.constant 0 : i32
    %c0_i32_1 = arith.constant 0 : i32
    return %c0_i32, %c0_i32_0 : i32, i32
  }
  func.func @transform_9(%arg0: i32, %arg1: i32) -> (i32, i32) {
    %c0_i32 = arith.constant 0 : i32
    %c0_i32_0 = arith.constant 0 : i32
    %c0_i32_1 = arith.constant 0 : i32
    return %c0_i32, %c0_i32_0 : i32, i32
  }
  func.func @transform_10(%arg0: i32, %arg1: i32) -> (i32, i32) {
    %c0_i32 = arith.constant 0 : i32
    %c0_i32_0 = arith.constant 0 : i32
    %c0_i32_1 = arith.constant 0 : i32
    return %c0_i32, %c0_i32_0 : i32, i32
  }
  func.func @transform_11(%arg0: i32, %arg1: i32) -> (i32, i32) {
    %c0_i32 = arith.constant 0 : i32
    %c0_i32_0 = arith.constant 0 : i32
    %c0_i32_1 = arith.constant 0 : i32
    return %c0_i32, %c0_i32_0 : i32, i32
  }
  func.func @transform_12(%arg0: i32, %arg1: i32) -> (i32, i32) {
    %c0_i32 = arith.constant 0 : i32
    %c0_i32_0 = arith.constant 0 : i32
    %c0_i32_1 = arith.constant 0 : i32
    return %c0_i32, %c0_i32_0 : i32, i32
  }
  func.func @transform_13(%arg0: i32, %arg1: i32) -> (i32, i32) {
    %c0_i32 = arith.constant 0 : i32
    %c0_i32_0 = arith.constant 0 : i32
    %c0_i32_1 = arith.constant 0 : i32
    return %c0_i32, %c0_i32_0 : i32, i32
  }
  func.func @transform_14(%arg0: i32, %arg1: i32) -> (i32, i32) {
    %c0_i32 = arith.constant 0 : i32
    %c0_i32_0 = arith.constant 0 : i32
    %c0_i32_1 = arith.constant 0 : i32
    return %c0_i32, %c0_i32_0 : i32, i32
  }
  func.func @transform_15(%arg0: i32, %arg1: i32) -> (i32, i32) {
    %c0_i32 = arith.constant 0 : i32
    %c0_i32_0 = arith.constant 0 : i32
    %c0_i32_1 = arith.constant 0 : i32
    return %c0_i32, %c0_i32_0 : i32, i32
  }
  func.func @transform_16(%arg0: i32, %arg1: i32) -> (i32, i32, i32) {
    %c0_i32 = arith.constant 0 : i32
    %c0_i32_0 = arith.constant 0 : i32
    return %arg0, %arg1, %c0_i32 : i32, i32, i32
  }
}

</mosaic_0001>

<bundles_post_ra>
// kernel: tpu_custom_call.1
= control target key start
LH: loop header
LB: loop body
LE: loop exit
PB: predicated region body
PF: predicated region fallthrough
CT: control target
= control target key end

     0   :  { %s2121_s0 = inlined_call_operand.vmem [shape: f32[2,8,32], index: 0, kind: input, shape index: {}]   ;;  %s2122_s1 = inlined_call_operand.hbm [shape: f32[2,8,32], index: 1, kind: input, shape index: {}]   ;;  %s2123_s2 = inlined_call_operand.vmem [shape: bf16[2,4,8,8], index: 2, kind: input, shape index: {}]   ;;  %s2124_s3 = inlined_call_operand.hbm [shape: bf16[2,4,8,8], index: 3, kind: input, shape index: {}]   ;;  %s2125_s4 = inlined_call_operand.hbm [shape: bf16[32,32], index: 4, kind: input, shape index: {}]   ;;  %s2126_s5 = inlined_call_operand.vmem [shape: f32[1,32], index: 5, kind: input, shape index: {}]   ;;  %s2127_s6 = inlined_call_operand.hbm [shape: bf16[32,32], index: 6, kind: input, shape index: {}]   ;;  %s2128_s7 = inlined_call_operand.vmem [shape: f32[1,32], index: 7, kind: input, shape index: {}]   ;;  %s2129_s8 = inlined_call_operand.hbm [shape: bf16[32,64], index: 8, kind: input, shape index: {}]   ;;  %s2130_s9 = inlined_call_operand.vmem [shape: f32[1,64], index: 9, kind: input, shape index: {}]   ;;  %s2131_s10 = inlined_call_operand.vmem [shape: bf16[64,32], index: 10, kind: input, shape index: {}]   ;;  %s2132_s11 = inlined_call_operand.vmem [shape: f32[1,32], index: 11, kind: input, shape index: {}]   ;;  %s2133_s12 = inlined_call_operand.vmem [shape: f32[1,32], index: 12, kind: input, shape index: {}]   ;;  %s2134_s13 = inlined_call_operand.vmem [shape: f32[1,32], index: 13, kind: input, shape index: {}]   ;;  %s2135_s14 = inlined_call_operand.vmem [shape: f32[1,32], index: 14, kind: input, shape index: {}]   ;;  %s2136_s15 = inlined_call_operand.vmem [shape: f32[1,32], index: 15, kind: input, shape index: {}]   ;;  %s2137_s16 = inlined_call_operand.hbm [shape: f32[2,8,32], index: 16, kind: output, shape index: {}]  }
   0x1   :  { %2147 = sst [smem:[#allocation25_spill]] %s2121_s0 }
   0x2   :  { %2148 = sst [smem:[#allocation26_spill]] %s2125_s4 }
   0x3   :  { %2149 = sst [smem:[#allocation27_spill]] %s2127_s6 }
   0x4   :  { %2150 = sst [smem:[#allocation28_spill]] %s2129_s8 }
   0x5   :  { %2151 = sst [smem:[#allocation29_spill]] %s2130_s9 }
   0x6   :  { %2152 = sst [smem:[#allocation30_spill]] %s2132_s11 }
   0x7   :  { %2153 = sst [smem:[#allocation31_spill]] %s2133_s12 }
   0x8   :  { %2154 = sst [smem:[#allocation32_spill]] %s2134_s13 }
   0x9   :  { %2155 = sst [smem:[#allocation33_spill]] %s2135_s14 }
   0xa   :  { %2156 = sst [smem:[#allocation34_spill]] %s2136_s15 }
   0xb   :  { %2157 = sst [smem:[#allocation35_spill]] %s2137_s16 }
   0xc   :  { %21 = vsyncpa [#allocation5], 0 }
   0xd   :  { %23 = vsyncpa [#allocation5 + $0x1], 0 }
   0xe   :  { %24 = vsyncpa [#allocation8], 0 }
   0xf   :  { %26 = vsyncpa [#allocation8 + $0x1], 0 }
  0x10   :  { %27 = vsyncpa [#allocation11], 0 }
  0x11   :  { %28 = vsyncpa [#allocation6], 0 }
  0x12   :  { %30 = vsyncpa [#allocation6 + $0x1], 0  ;;  %s1838_s21 = smov 0   ;;  %s1840_s22 = smov 0  }
  0x13   :  { %s1842_s23 = smov 0   ;;  %s1844_s24 = smov 0  }
  0x14   :  { %s1846_s25 = smov 0   ;;  %s1848_s26 = smov 0  }
  0x15 LB: > { %2158 = sst [smem:[#allocation19_spill]] %s1715_s21  ;;  %s1869_s27 = sadd.s32 4294967295, %s1735_s26   ;;  %s1735_s26 = sphi %s1848_s26, %s36_s26   ;;  %s1731_s25 = sphi %s1846_s25, %s2192_s25   ;;  %s1727_s24 = sphi %s1844_s24, %s2191_s24   ;;  %s1723_s23 = sphi %s1842_s23, %s2187_s23   ;;  %s1719_s22 = sphi %s1840_s22, %s2190_s22   ;;  %s1715_s21 = sphi %s1838_s21, %s2189_s21  }
  0x16   : > { %2159 = sst [smem:[#allocation20_spill]] %s1723_s23  ;;  %p1264_p0 = scmp.ge.s32.totalorder %s1735_s26, 1 }
  0x17   : > { %p99_p1 = scmp.eq.s32.totalorder %s1869_s27, 0  ;;  %p441_p2 = scmp.lt.s32.totalorder %s1735_s26, 3 }
  0x18   : > { %s2160_s4 = sld [smem:[#allocation26_spill]]  ;;  %s1741_s17 = smov [#allocation9]  }
  0x19   : > { %p1877_p3 = pnand %p1264_p0, %p441_p2  ;;  %s454_s18 = sshll.u32 %s1741_s17, 4  ;;  %s455_s18 = int_to_ptr.vmem [resolvable:$true] %s454_s18 }
  0x1a   : > { %p1268_p6 = scmp.ge.s32.totalorder %s1735_s26, 2  ;;  %s2163_s6 = sld [smem:[#allocation27_spill]] }
  0x1b   : > { %p1372_p4 = pneg %p1877_p3  ;;  %s2140_s17 = smov 4  }
  0x1c   : > { %s1744_s15 = smov [#allocation10]   ;;  %s2164_s8 = sld [smem:[#allocation28_spill]] }
  0x1d   : > { %p1885_p5 = pnand %p1372_p4, %p99_p1  ;;  %s471_s16 = sshll.u32 %s1744_s15, 4  ;;  %s472_s16 = int_to_ptr.vmem [resolvable:$true] %s471_s16 }
  0x1e   : > { %s452_s30 = sshll.u32 %s2160_s4, 4  ;;  %s2139_s4 = smov 64   ;;  %s453_s30 = int_to_ptr.hbm [resolvable:$true] %s452_s30 }
  0x1f   : > { %1375 = dma.hbm_to_vmem [thread:$0]  (!%p1885_p5), %s453_s30, 256, %s455_s18, [#allocation8], %s2139_s4, %s2139_s4, %s2140_s17  }
  0x20   : > { %s469_s29 = sshll.u32 %s2163_s6, 4  ;;  %s1745_s30 = smov [#allocation12]   ;;  %s470_s29 = int_to_ptr.hbm [resolvable:$true] %s469_s29 }
  0x21   : > { %1378 = dma.hbm_to_vmem [thread:$0]  (!%p1885_p5), %s470_s29, 256, %s472_s16, [#allocation11], %s2139_s4, %s2139_s4, %s2140_s17  }
  0x22   : > { %s486_s6 = sshll.u32 %s2164_s8, 4  ;;  %s488_s18 = sshll.u32 %s1745_s30, 4  ;;  %s487_s6 = int_to_ptr.hbm [resolvable:$true] %s486_s6  ;;  %s489_s18 = int_to_ptr.vmem [resolvable:$true] %s488_s18 }
  0x23   : > { %1381 = dma.hbm_to_vmem [thread:$0]  (!%p1885_p5), %s487_s6, 256, %s489_s18, [#allocation11], %s2139_s4, %s2139_s4, %s2140_s17  }
  0x24   : > { %s1263_s15 = sadd.s32 4294967294, %s1735_s26   ;;  %s48_s20 = sadd.s32 1, %s1731_s25 }
  0x25   : > { %s85_s28 = sadd.s32 1, %s1723_s23  ;;  %p50_p7 = scmp.ge.s32.totalorder %s48_s20, 2 }
  0x26   : > { %p92_p8 = scmp.ne.s32.totalorder %s1723_s23, %s1719_s22  ;;  %p93_p9 = scmp.eq.s32.totalorder %s1735_s26, 0 }
  0x27   : > { %p98_p10 = scmp.ne.s32.totalorder %s1719_s22, %s1715_s21  ;;  %s2194_s20 = smov (%p50_p7, %s48_s20), 0 }
  0x28   : > { %2165 = sst [smem:[#allocation21_spill]] %s2194_s20  ;;  %p1921_p11 = por %p93_p9, %p92_p8 }
  0x29   : > { %p1927_p12 = por %p99_p1, %p98_p10  ;;  %s80_s19 = ssub.s32 %s1731_s25, %s2194_s20 }
  0x2a   : > { %p428_p13 = scmp.eq.s32.totalorder %s1869_s27, 1  ;;  %p83_p0 = scmp.eq.s32.totalorder %s80_s19, 0 }
  0x2b   : > { %p434_p2 = scmp.eq.s32.totalorder %s1263_s15, 1  ;;  %p1396_p5 = scmp.lt.s32.totalorder %s1735_s26, 2 }
  0x2c   : > { %p1934_p4 = por %p428_p13, %p92_p8  ;;  %s533_s4 = sand.u32 1, %s1723_s23  }
  0x2d   : > { %s1940_s30 = scalar_select %p83_p0, %s1723_s23, %s85_s28  }
  0x2e   : > { %s2168_s29 = scalar_select %p1934_p4, 1, 0 }
  0x2f   : > { %2170 = sst [smem:[#allocation23_spill]] %s1940_s30  ;;  %p1942_p7 = por %p434_p2, %p98_p10 }
  0x30   : > { %2169 = sst [smem:[#allocation22_spill]] %s2168_s29  ;;  %s1269_s17 = sshll.u32 %s533_s4, 3 }
  0x31   : > { %s2171_s18 = scalar_select %p1942_p7, 1, 0 }
  0x32   : > { %s1270_s8 = sshll.u32 %s1731_s25, 3  ;;  %s537_s19 = scalar_lea.vmem [#allocation4], %s1269_s17 }
  0x33   : > { %2172 = sst [smem:[#allocation24_spill]] %s2171_s18  ;;  %s542_s15 = scalar_lea.hbm %s2122_s1, %s1270_s8 }
  0x34   : > { %s546_s14 = sshll.u32 %s537_s19, 4  ;;  %s544_s11 = sshll.u32 %s542_s15, 4  ;;  %s547_s14 = int_to_ptr.vmem [resolvable:$true] %s546_s14  ;;  %s545_s11 = int_to_ptr.hbm [resolvable:$true] %s544_s11 }
  0x35   : > { %p1383_p8 = pnand %p1396_p5, %p1921_p11  ;;  %s1271_s28 = sshll.u32 %s533_s4, 4 }
  0x36   : > { %s1338_s30 = sshll.u32 %s1731_s25, 4  ;;  %s534_s29 = scalar_lea.sflag [#allocation5], %s533_s4 }
  0x37   : > { %1385 = dma.hbm_to_vmem [thread:$0]  (!%p1383_p8), %s545_s11, 128, %s547_s14, %s534_s29  }
  0x38   : > { %s565_s18 = scalar_lea.vmem [#allocation7], %s1271_s28  ;;  %s561_s9 = sand.u32 1, %s1735_s26  }
  0x39   : > { %s573_s23 = sshll.u32 %s565_s18, 4  ;;  %s570_s21 = scalar_lea.hbm %s2124_s3, %s1338_s30  ;;  %s574_s23 = int_to_ptr.vmem [resolvable:$true] %s573_s23 }
  0x3a   : > { %s571_s8 = sshll.u32 %s570_s21, 4  ;;  %s562_s17 = scalar_lea.sflag [#allocation8], %s561_s9  ;;  %s572_s8 = int_to_ptr.hbm [resolvable:$true] %s571_s8 }
  0x3b   : > { %s2173_s20 = smov 4   ;;  %s2174_s15 = smov 64  }
  0x3c   : > { %1388 = dma.hbm_to_vmem [thread:$0]  (!%p1383_p8), %s572_s8, 256, %s574_s23, %s562_s17, %s2174_s15, %s2174_s15, %s2173_s20  }
  0x3d   : > { %585 = sbr.rel (%p1877_p3) target bundleno = 1943 (0x797), region = 84  ;;  %s1964_s4 = sand.u32 (!%p1877_p3), 1, %s1719_s22  }
  0x3e   : > { %s1275_s11 = sshll.u32 (!%p1877_p3), %s1964_s4, 3  ;;  %s588_s12 = scalar_lea.sflag (!%p1877_p3), [#allocation5], %s1964_s4 }
  0x3f   : > { %s591_s13 = scalar_lea.vmem (!%p1877_p3), [#allocation4], %s1275_s11 }
  0x42   : > { %1694 = dma.done.wait (%p1927_p12), %s588_s12, 128  }
  0x43   : > { %1696 = vsyncadd (%p1927_p12), %s588_s12, 4294967168  ;;  %s597_s9 = sand.u32 1, %s1869_s27   ;;  %s1276_s14 = sshll.u32 %s1964_s4, 4 }
  0x44   : > { %s598_s23 = scalar_lea.sflag [#allocation8], %s597_s9  ;;  %s1976_s0 = scalar_lea.vmem [#allocation7], %s1276_s14 }
  0x45   : > { %1698 = dma.done.wait (%p1927_p12), %s598_s23, 256  }
  0x46   : > { %1700 = vsyncadd (%p1927_p12), %s598_s23, 4294967040 }
  0x47   : > { %1702 = dma.done.wait (%p99_p1), [#allocation8], 256  }
  0x48   : > { %1704 = vsyncadd (%p99_p1), [#allocation8], 4294967040 }
  0x49   : > { %1706 = dma.done.wait (%p99_p1), [#allocation11], 512  }
  0x4a   : > { %1708 = vsyncadd (%p99_p1), [#allocation11], 4294966784  ;;  %p683_p3 = scmp.lt.s32.totalorder %s1727_s24, 1  ;;  %s2175_s19 = sld [smem:[#allocation25_spill]]  ;;  %v1341_v0 = vld [vmem:[#allocation9 + $0x8] sm:$0xff]  ;;  %v697_v2 = vld [vmem:[%s591_s13] sm:$0xff] }
  0x4b   : > { %730 = vmatpush.bf16.msra.mxu0 %v1341_v0  ;;  %v1340_v3 = vld [vmem:[#allocation9] sm:$0xff]  ;;  %vm720_vm0 = vcmask 261120   ;;  %v1469_v6 = vld [vmem:[%s2126_s5] ss:$0 sm:$0xff]  ;;  %vm738_vm1 = vcmask 60416   ;;  %s1746_s15 = smov 104  }
  0x4c   : > { %s684_s16 = scalar_select %p683_p3, %s1727_s24, 1 }
  0x4d   : > { %s1747_s12 = smov 120   ;;  %s1748_s13 = smov 112  }
  0x4e   : > { %s1281_s29 = sshll.u32 %s684_s16, 3  ;;  %s1339_s30 = sshll.u32 %s684_s16, 4 }
  0x4f   : > { %s1998_s17 = scalar_lea.vmem %s2123_s2, %s1339_s30  ;;  %731 = vmatpush.bf16.msra.mxu0 %v1340_v3  ;;  %s2013_s9 = scalar_lea.vmem [#allocation13], %s1275_s11 }
  0x50   : > { %s689_s28 = scalar_lea.vmem %s2175_s19, %s1281_s29  ;;  %s2015_s14 = smov 0  }
  0x51   : > { %v2000_v1 = vld [vmem:[%s689_s28] sm:$0xff] }
  0x52   : > { %v698_v4 = vadd.f32 %v697_v2, %v2000_v1 }
  0x54   : > { %v699_v5 = vpack.c.bf16 %v698_v4, %v698_v4 }
  0x56   : > { %1292 = vmatmul.msk.bf16.vlgmr.msra.gmra.mxu0 %vm720_vm0, %v699_v5 }
  0xd3   : > { %v733_v7 = vpop.f32.mrf.mxu0 }
  0xd4   : > { %v734_v8 = vadd.f32 %v1469_v6, %v733_v7 }
  0xd6   : > { %v737_v9 = vpack.c.bf16 %v734_v8, %v734_v8 }
  0xd8   : > { %751 = vrot.lane.b32.xlu1 %v737_v9, %s1746_s15  ;;  %741 = vrot.lane.b32.xlu0 %v737_v9, %s1747_s12  ;;  %739 = vst.msk [vmem:[#allocation2] sm:$0xf] %vm738_vm1, %v737_v9 }
  0xdb   : > { %v735_v10 = vpop.f32.mrf.mxu0 }
  0xe0   : > { %746 = vrot.lane.b32.xlu0 %v737_v9, %s1748_s13 }
 0x14a   : > { %v752_v11 = vpop.permute.xlu1 %751  ;;  %v742_v12 = vpop.permute.xlu0 %741 }
 0x14b   : > { %755 = vst.msk [vmem:[#allocation2 + $0xc] sm:$0xf] %vm738_vm1, %v752_v11 }
 0x14c   : > { %745 = vst.msk [vmem:[#allocation2 + $0x4] sm:$0xf] %vm738_vm1, %v742_v12 }
 0x152   : > { %v747_v13 = vpop.permute.xlu0 %746 }
 0x153   : > { %750 = vst.msk [vmem:[#allocation2 + $0x8] sm:$0xf] %vm738_vm1, %v747_v13 }
 0x154 LB: >> { %s2021_s23 = sshll.u32 %s1739_s14, 2  ;;  %vm772_vm2 = vcmask 1043456   ;;  %vm768_vm3 = vcmask 64512   ;;  %s761_s14 = sadd.s32 1, %s1739_s14   ;;  %s1739_s14 = sphi %s2015_s14, %s761_s14  }
 0x155   : >> { %s766_s16 = scalar_lea.vmem %s1998_s17, %s2021_s23  ;;  %s763_s11 = scalar_lea.vmem [#allocation2], %s2021_s23 }
 0x156   : >> { %v767_v14 = vld [vmem:[%s766_s16] sm:$0xf]  ;;  %s816_s29 = scalar_lea.vmem %s1976_s0, %s2021_s23 [#allocation7]  ;;  %s839_s30 = scalar_lea.vmem [#allocation3], %s2021_s23 }
 0x157   : >> { %v774_v15 = vsel %vm772_vm2, %v767_v14, 0  ;;  %v817_v25 = vld [vmem:[%s816_s29] sm:$0xf]  ;;  %p758_p1 = scmp.ge.s32.totalorder %s761_s14, 4  }
 0x158   : >> { %783 = vmatpush.bf16.msra.mxu0 %v774_v15  ;;  %v822_v26 = vsel %vm772_vm2, %v817_v25, 0  ;;  %s1749_s6 = smov (%p758_p1), 8   ;;  %s1750_s18 = smov (%p758_p1), 24   ;;  %v1343_v51 = vld [vmem:[#allocation10 + $0x8] sm:$0xff] (%p758_p1)  ;;  %v1342_v52 = vld [vmem:[#allocation10] sm:$0xff] (%p758_p1)  ;;  %vm867_vm8 = vcmask (%p758_p1), 130048  }
 0x159   : >> { %831 = vmatpush.bf16.msra.mxu1 %v822_v26  ;;  %s1751_s19 = smov (%p758_p1), 16   ;;  %vm870_vm9 = vcmask (%p758_p1), 195584   ;;  %v1474_v60 = vld [vmem:[%s2128_s7] ss:$0 sm:$0xff] (%p758_p1)  ;;  %v1752_v3 = vmov (%p758_p1), 32.0   ;;  %v1344_v15 = vld [vmem:[#allocation12] sm:$0xff] (%p758_p1) }
 0x15a   : >> { %v764_v16 = vld [vmem:[%s763_s11] sm:$0xf]  ;;  %s2176_s12 = sld [smem:[#allocation31_spill]] (%p758_p1)  ;;  %vm1023_vm14 = vcmask (%p758_p1), 523264   ;;  %s1335_s8 = sshll.u32 (%p758_p1), %s1727_s24, 3 }
 0x15b   : >> { %1295 = vmatmul.msk.bf16.vlgmr.msra.gmra.mxu0 %vm768_vm3, %v764_v16  ;;  %v1349_v16 = vld [vmem:[%s2131_s10 + $0x18] sm:$0xff] (%p758_p1)  ;;  %s2177_s23 = sld [smem:[#allocation32_spill]] (%p758_p1)  ;;  %s1088_s24 = sshll.u32 (%p758_p1), %s2013_s9, 4  ;;  %s1089_s24 = int_to_ptr.vmem [resolvable:$true] %s1088_s24 }
 0x15c   : > { %901 = vmatpush.bf16.msra.mxu0 (%p758_p1), %v1343_v51  ;;  %1031 = vmatpush.bf16.msra.mxu2 (%p758_p1), %v1349_v16  ;;  %s2179_s21 = sld [smem:[#allocation30_spill]] (%p758_p1) }
 0x15d   : > { %s2180_s20 = sld [smem:[#allocation33_spill]] (%p758_p1) }
 0x15e   : > { %s2181_s13 = sld [smem:[#allocation35_spill]] (%p758_p1) }
 0x15f   : > { %s2183_s29 = sld [smem:[#allocation34_spill]] (%p758_p1) }
 0x160   : > { %902 = vmatpush.bf16.msra.mxu0 (%p758_p1), %v1342_v52 }
 0x164   : > { %s1086_s14 = scalar_lea.hbm (%p758_p1), %s2181_s13, %s1335_s8 }
 0x1d8   : >> { %v785_v17 = vpop.f32.mrf.mxu0 }
 0x1d9   : >> { %v789_v18 = vsel %vm768_vm3, %v785_v17, -inf }
 0x1da   : >> { %790 = vmax.xlane.f32.xlu0 %v789_v18 }
 0x1e0   : >> { %v787_v19 = vpop.f32.mrf.mxu0 }
 0x1e1   : > { %v1348_v19 = vld [vmem:[%s2131_s10 + $0x10] sm:$0xff] (%p758_p1) }
 0x1e2   : > { %1032 = vmatpush.bf16.msra.mxu2 (%p758_p1), %v1348_v19 }
 0x24d   : >> { %v791_v20 = vpop.xlane.xlu0 %790 }
 0x24e   : >> { %v792_v21 = vsub.f32 %v785_v17, %v791_v20 }
 0x250   : >> { %v793_v22 = vmul.f32 1.442695, %v792_v21 }
 0x252   : >> { %1470 = vpow2.f32 %v793_v22 }
 0x258   : >> { %v1471_v23 = vpop.eup %1470 }
 0x259   : >> { %v795_v24 = vsel %vm768_vm3, %v1471_v23, 0.0 }
 0x25a   : >> { %796 = vadd.xlane.f32.xlu0 %v795_v24 }
 0x2cd   : >> { %v797_v27 = vpop.xlane.xlu0 %796 }
 0x2ce   : >> { %1472 = vrcp.f32 %v797_v27  ;;  %v809_v31 = vand.u32 2147483648, %v797_v27  ;;  %v807_v33 = vand.u32 2147483647, %v797_v27  ;;  %vm803_vm5 = vweird.f32 %v797_v27 }
 0x2cf   : > { %1481 = vrcp.f32 (%p758_p1), %v1752_v3 }
 0x2d0   : >> { %v810_v35 = vor.u32 1.1754944e-38, %v809_v31  ;;  %vm808_vm7 = vcmp.eq.f32.partialorder %v807_v33, 8.507059e+37 }
 0x2d4   : >> { %v1473_v28 = vpop.eup %1472 }
 0x2d5   : >> { %v799_v29 = vmul.f32 %v1473_v28, %v797_v27  ;;  %vm804_vm4 = vweird.f32 %v1473_v28  ;;  %v1482_v4 = vpop.eup (%p758_p1), %1481  ;;  %v1475_v27 = vld [vmem:[%s2176_s12] ss:$0 sm:$0xff] (%p758_p1) }
 0x2d6   : >> { %vm805_vm6 = vmor %vm803_vm5, %vm804_vm4  ;;  %v913_v5 = vmul.f32 (%p758_p1), 32.0, %v1482_v4  ;;  %vm917_vm10 = vweird.f32 (%p758_p1), %v1482_v4 }
 0x2d7   : >> { %v800_v30 = vsub.f32 1.0, %v799_v29 }
 0x2d8   : > { %v914_v6 = vsub.f32 (%p758_p1), 1.0, %v913_v5 }
 0x2d9   : >> { %v801_v32 = vmul.f32 %v1473_v28, %v800_v30  ;;  %v1476_v30 = vld [vmem:[%s2177_s23] ss:$0 sm:$0xff] (%p758_p1) }
 0x2da   : > { %v915_v7 = vmul.f32 (%p758_p1), %v1482_v4, %v914_v6 }
 0x2db   : >> { %v802_v34 = vadd.f32 %v1473_v28, %v801_v32 }
 0x2dc   : > { %v916_v8 = vadd.f32 (%p758_p1), %v1482_v4, %v915_v7 }
 0x2dd   : >> { %v806_v36 = vsel %vm805_vm6, %v1473_v28, %v802_v34  ;;  %v1347_v34 = vld [vmem:[%s2131_s10 + $0x8] sm:$0xff] (%p758_p1) }
 0x2de   : >> { %v811_v37 = vsel %vm808_vm7, %v810_v35, %v806_v36  ;;  %v918_v9 = vsel (%p758_p1), %vm917_vm10, %v1482_v4, %v916_v8  ;;  %1033 = vmatpush.bf16.msra.mxu2 (%p758_p1), %v1347_v34  ;;  %v1346_v35 = vld [vmem:[%s2131_s10] sm:$0xff] (%p758_p1) }
 0x2df   : >> { %v813_v38 = vmul.f32 %v1471_v23, %v811_v37 }
 0x2e1   : >> { %v814_v39 = vpack.c.bf16 %v813_v38, %v813_v38 }
 0x2e2   : > { %1034 = vmatpush.bf16.msra.mxu2 (%p758_p1), %v1346_v35 }
 0x2e3   : >> { %1297 = vmatmul.msk.bf16.vlgmr.msra.gmra.mxu1 %vm768_vm3, %v814_v39 }
 0x360   : >> { %v833_v40 = vpop.f32.mrf.mxu1 }
 0x361   : >> { %v837_v41 = vpack.c.bf16 %v833_v40, %v833_v40 }
 0x363   : >> { %840 = vst.msk [vmem:[%s839_s30] sm:$0xf] %vm738_vm1, %v837_v41  ;;  %s1090_s30 = sshll.u32 (%p758_p1), %s1086_s14, 4  ;;  %s1091_s30 = int_to_ptr.hbm [resolvable:$true] %s1090_s30 }
 0x364   : > { %760 = sbr.rel (!%p758_p1) target bundleno = 340 (0x154), region = 177 }
 0x368   : >> { %v835_v42 = vpop.f32.mrf.mxu1 }
 0x369   : > { %v1478_v42 = vld [vmem:[%s2179_s21] ss:$0 sm:$0xff]  ;;  %s1657_s21 = scalar_lea.hbm %s2181_s13, 16 }
 0x36a   : > { %v843_v43 = vld [vmem:[#allocation3 + $0x4] sm:$0xf]  ;;  %v1351_v44 = vld [vmem:[#allocation3 + $0x8] sm:$0xff]   ;;  %v841_v54 = vld [vmem:[#allocation3] sm:$0xf] }
 0x36b   : > { %v849_v45 = vunpack.c.l.b16 %v843_v43  ;;  %v1353_v46 = vunpack.c.h.b16 %v1351_v44  ;;  %v1352_v49 = vunpack.c.l.b16 %v1351_v44 }
 0x36d   : > { %v850_v47 = vpack.c.b16 %v849_v45, %v849_v45  ;;  %v860_v48 = vpack.c.b16 %v1353_v46, %v1353_v46  ;;  %v855_v50 = vpack.c.b16 %v1352_v49, %v1352_v49 }
 0x36f   : > { %851 = vrot.lane.b32.xlu0 %v850_v47, %s1749_s6  ;;  %861 = vrot.lane.b32.xlu1 %v860_v48, %s1750_s18  ;;  %s1075_s6 = scalar_lea.sflag [#allocation6], %s1964_s4  ;;  %s1651_s18 = sshra.s32 %s1091_s30, 4  ;;  %s1652_s18 = int_to_ptr.hbm [resolvable:$true] %s1651_s18 }
 0x370   : > { %p1658_p12 = scmp.lt.s32.totalorder %s1652_s18, %s2181_s13 }
 0x377   : > { %856 = vrot.lane.b32.xlu0 %v855_v50, %s1751_s19  ;;  %s2178_s19 = sld [smem:[#allocation29_spill]] }
 0x37d   : > { %v1477_v36 = vld [vmem:[%s2178_s19] ss:$0 sm:$0xff]  ;;  %s1653_s19 = scalar_lea.hbm %s1652_s18, 8 }
 0x37e   : > { %p1654_p9 = scmp.ne.s32.totalorder %s1652_s18, %s1653_s19  ;;  %p1659_p13 = scmp.lt.s32.totalorder %s1657_s21, %s1653_s19 }
 0x380   : > { %p1655_p10 = pnand %p1654_p9, %p1934_p4  ;;  %p1660_p0 = por %p1659_p13, %p1658_p12 }
 0x382   : > { %p1656_p11 = pneg %p1655_p10 }
 0x384   : > { %p1661_p2 = pnand %p1660_p0, %p1656_p11 }
 0x3e1   : > { %v852_v53 = vpop.permute.xlu0 %851  ;;  %v862_v55 = vpop.permute.xlu1 %861 }
 0x3e2   : > { %v866_v56 = vsel %vm768_vm3, %v841_v54, %v852_v53 }
 0x3e9   : > { %v857_v57 = vpop.permute.xlu0 %856 }
 0x3ea   : > { %v869_v58 = vsel %vm867_vm8, %v866_v56, %v857_v57 }
 0x3eb   : > { %v872_v59 = vsel %vm870_vm9, %v869_v58, %v862_v55 }
 0x3ec   : > { %1307 = vmatmul.msk.bf16.vlgmr.msra.gmra.mxu0 %vm720_vm0, %v872_v59 }
 0x469   : > { %v904_v61 = vpop.f32.mrf.mxu0 }
 0x46a   : > { %v905_v62 = vadd.f32 %v1474_v60, %v904_v61 }
 0x46c   : > { %v908_v63 = vadd.f32 %v905_v62, %v2000_v1  ;;  %v1345_v1 = vld [vmem:[#allocation12 + $0x8] sm:$0xff]  ;;  %v1479_v62 = vld [vmem:[%s2180_s20] ss:$0 sm:$0xff] }
 0x46d   : > { %978 = vmatpush.bf16.msra.mxu1 %v1345_v1 }
 0x46e   : > { %v909_v0 = vsel %vm720_vm0, %v908_v63, 0.0 }
 0x46f   : > { %910 = vadd.xlane.f32.xlu1 %v909_v0 }
 0x471   : > { %v906_v2 = vpop.f32.mrf.mxu0  ;;  %979 = vmatpush.bf16.msra.mxu1 %v1344_v15 }
 0x472   : > { %v1480_v2 = vld [vmem:[%s2183_s29] ss:$0 sm:$0xff] }
 0x4e2   : > { %v911_v10 = vpop.xlane.xlu1 %910 }
 0x4e3   : > { %v919_v11 = vmul.f32 %v918_v9, %v911_v10 }
 0x4e5   : > { %v920_v12 = vsub.f32 %v908_v63, %v919_v11 }
 0x4e7   : > { %v921_v13 = vmul.f32 %v920_v12, %v920_v12 }
 0x4e9   : > { %v922_v14 = vsel %vm720_vm0, %v921_v13, 0.0 }
 0x4ea   : > { %923 = vadd.xlane.f32.xlu2 %v922_v14 }
 0x55d   : > { %v924_v17 = vpop.xlane.xlu2 %923 }
 0x55e   : > { %v925_v18 = vmul.f32 %v924_v17, %v918_v9 }
 0x560   : > { %v926_v20 = vadd.f32 1e-05, %v925_v18 }
 0x562   : > { %1483 = vrsqrt.f32 %v926_v20  ;;  %vm933_vm12 = vweird.f32 %v926_v20 }
 0x568   : > { %v1484_v21 = vpop.eup %1483 }
 0x569   : > { %v928_v22 = vmul.f32 %v1484_v21, %v926_v20  ;;  %vm934_vm11 = vweird.f32 %v1484_v21 }
 0x56a   : > { %vm935_vm13 = vmor %vm933_vm12, %vm934_vm11 }
 0x56b   : > { %v929_v23 = vmul.f32 %v1484_v21, %v928_v22 }
 0x56d   : > { %v930_v24 = vmul.f32 0.5, %v929_v23 }
 0x56f   : > { %v931_v25 = vsub.f32 1.5, %v930_v24 }
 0x571   : > { %v932_v26 = vmul.f32 %v1484_v21, %v931_v25 }
 0x573   : > { %v936_v28 = vsel %vm935_vm13, %v1484_v21, %v932_v26 }
 0x574   : > { %v937_v29 = vmul.f32 %v936_v28, %v920_v12 }
 0x576   : > { %v942_v31 = vmul.f32 %v1475_v27, %v937_v29 }
 0x578   : > { %v947_v32 = vadd.f32 %v1476_v30, %v942_v31 }
 0x57a   : > { %v948_v33 = vpack.c.bf16 %v947_v32, %v947_v32 }
 0x57c   : > { %1316 = vmatmul.msk.bf16.vlgmr.msra.gmra.mxu1 %vm720_vm0, %v948_v33 }
 0x5f9   : > { %v981_v37 = vpop.f32.mrf.mxu1 }
 0x5fa   : > { %v982_v38 = vadd.f32 %v1477_v36, %v981_v37 }
 0x5fc   : > { %v985_v39 = vmax.f32 %v982_v38, 0.0 }
 0x5fe   : > { %v986_v40 = vpack.c.bf16 %v985_v39, %v985_v39 }
 0x600   : > { %1333 = vmatmul.msk.bf16.vlgmr.msra.gmra.mxu2 %vm1023_vm14, %v986_v40 }
 0x601   : > { %v983_v41 = vpop.f32.mrf.mxu1 }
 0x683   : > { %v1036_v43 = vpop.f32.mrf.mxu2 }
 0x684   : > { %v1037_v44 = vadd.f32 %v1478_v42, %v1036_v43 }
 0x686   : > { %v1040_v45 = vadd.f32 %v1037_v44, %v947_v32 }
 0x688   : > { %v1041_v46 = vsel %vm720_vm0, %v1040_v45, 0.0 }
 0x689   : > { %1042 = vadd.xlane.f32.xlu2 %v1041_v46 }
 0x68b   : > { %v1038_v47 = vpop.f32.mrf.mxu2 }
 0x6fc   : > { %v1043_v48 = vpop.xlane.xlu2 %1042 }
 0x6fd   : > { %v1044_v49 = vmul.f32 %v1043_v48, %v918_v9 }
 0x6ff   : > { %v1045_v50 = vsub.f32 %v1040_v45, %v1044_v49 }
 0x701   : > { %v1046_v51 = vmul.f32 %v1045_v50, %v1045_v50 }
 0x703   : > { %v1047_v52 = vsel %vm720_vm0, %v1046_v51, 0.0 }
 0x704   : > { %1048 = vadd.xlane.f32.xlu0 %v1047_v52 }
 0x777   : > { %v1049_v53 = vpop.xlane.xlu0 %1048 }
 0x778   : > { %v1050_v54 = vmul.f32 %v1049_v53, %v918_v9 }
 0x77a   : > { %v1051_v55 = vadd.f32 1e-05, %v1050_v54 }
 0x77c   : > { %1485 = vrsqrt.f32 %v1051_v55  ;;  %vm1058_vm1 = vweird.f32 %v1051_v55 }
 0x782   : > { %v1486_v56 = vpop.eup %1485 }
 0x783   : > { %v1053_v57 = vmul.f32 %v1486_v56, %v1051_v55  ;;  %vm1059_vm15 = vweird.f32 %v1486_v56 }
 0x784   : > { %vm1060_vm2 = vmor %vm1058_vm1, %vm1059_vm15 }
 0x785   : > { %v1054_v58 = vmul.f32 %v1486_v56, %v1053_v57 }
 0x787   : > { %v1055_v59 = vmul.f32 0.5, %v1054_v58 }
 0x789   : > { %v1056_v60 = vsub.f32 1.5, %v1055_v59 }
 0x78b   : > { %v1057_v61 = vmul.f32 %v1486_v56, %v1056_v60 }
 0x78d   : > { %v1061_v63 = vsel %vm1060_vm2, %v1486_v56, %v1057_v61 }
 0x78e   : > { %v1062_v0 = vmul.f32 %v1061_v63, %v1045_v50 }
 0x790   : > { %v1067_v3 = vmul.f32 %v1479_v62, %v1062_v0 }
 0x792   : > { %v1072_v4 = vadd.f32 %v1480_v2, %v1067_v3 }
 0x794   : > { %1073 = vst.msk [vmem:[%s2013_s9] sm:$0xff] %vm720_vm0, %v1072_v4 }
 0x795   : > { %1664 = shalt.err (!%p1661_p2)
}
 0x796   : > { %1370 = dma.vmem_to_hbm [thread:$0]  (%p1934_p4), %s1089_s24, 128, %s1091_s30, %s1075_s6  }
 0x797 PF: > { %s2184_s4 = sld [smem:[#allocation19_spill]]  ;;  %p1390_p5 = pnand %p1268_p6, %p1942_p7 }
 0x799   : > { %p1391_p8 = pneg %p1390_p5 }
 0x79d   : > { %s1102_s27 = sand.u32 1, %s2184_s4  }
 0x79e   : > { %s1103_s20 = scalar_lea.sflag [#allocation6], %s1102_s27 }
 0x79f   : > { %1710 = dma.done.wait (%p1391_p8), %s1103_s20, 128  }
 0x7a0   : > { %1712 = vsyncadd (%p1391_p8), %s1103_s20, 4294967168  ;;  %s36_s26 = sadd.s32 1, %s1735_s26   ;;  %s2186_s15 = sld [smem:[#allocation20_spill]] }
 0x7a1   : > { %p33_p3 = scmp.ge.s32.totalorder %s36_s26, 4   ;;  %s2187_s23 = sld [smem:[#allocation23_spill]] }
 0x7a2   : > { %s2188_s12 = sld [smem:[#allocation21_spill]]  ;;  %s2189_s21 = smov %s1719_s22 }
 0x7a3   : > { %s2191_s24 = smov %s1731_s25 }
 0x7a4   :  { %35 = sbr.rel (!%p33_p3) target bundleno = 21 (0x15), region = 188 }
 0x7a6   : > { %s2190_s22 = smov %s2186_s15 }
 0x7a8   : > { %s2192_s25 = smov %s2188_s12 }
 0x7a9   :  { %1109 = vsyncpa [#allocation5], 1 }
 0x7aa   :  { %1111 = vsyncpa [#allocation5 + $0x1], 1 }
 0x7ab   :  { %1112 = vsyncpa [#allocation8], 1 }
 0x7ac   :  { %1114 = vsyncpa [#allocation8 + $0x1], 1 }
 0x7ad   :  { %1115 = vsyncpa [#allocation11], 1 }
 0x7ae   :  { %1116 = vsyncpa [#allocation6], 1 }
 0x7af   :  { %1118 = vsyncpa [#allocation6 + $0x1], 1 }

</bundles_post_ra>
